<compile_context>
chip_gen: v6e
topology: v6e:2x2x1
jax: 0.10.0
libtpu: 0.0.40
codegen_flags: <defaults>
</compile_context>

<pallas_src>
import math
import functools

import jax
import jax.numpy as jnp
from jax.experimental import pallas as pl
from jax.experimental.pallas import tpu as pltpu


def bilinear_kernel(x1_ref, x2_ref, e1_ref, e2_ref, w_ref, b_ref, o_ref):
    # x1_ref: (TN, I1), x2_ref: (TN, I2)
    # e1_ref: (I1, K),  e2_ref: (I2, K)     with K = I1*I2 (one-hot expanders)
    # w_ref : (K, OP),  b_ref: (1, OP),  o_ref: (TN, OP)
    #
    # Expand both inputs to the outer-product feature space on the MXU:
    #   x1e[n, i*I2+j] = x1[n, i]
    #   x2e[n, i*I2+j] = x2[n, j]
    x1e = jnp.dot(x1_ref[...], e1_ref[...], preferred_element_type=jnp.float32)
    x2e = jnp.dot(x2_ref[...], e2_ref[...], preferred_element_type=jnp.float32)

    z = x1e * x2e                                   # (TN, K) on the VPU

    # Main GEMM: (TN, K) x (K, OP) -> (TN, OP), f32 accumulation.
    y = jnp.dot(z.astype(w_ref.dtype), w_ref[...],
                preferred_element_type=jnp.float32)

    o_ref[...] = (y + b_ref[...].astype(jnp.float32)).astype(o_ref.dtype)


@functools.partial(jax.jit, static_argnames=("tile_n",))
def bilinear(x1, x2, weight, bias, *, tile_n=256):
    N, in1 = x1.shape
    _, in2 = x2.shape
    out_f = weight.shape[0]
    K = in1 * in2
    dtype = x1.dtype

    # --- batch tiling: multiple of 8, clamped for small N, pad ragged N ---
    n_pad8 = ((N + 7) // 8) * 8
    tn = max(8, min(tile_n, n_pad8))
    tn = ((tn + 7) // 8) * 8
    n_pad = ((N + tn - 1) // tn) * tn

    # --- lane-dense output: pad OUT to a multiple of 128 ---
    out_p = ((out_f + 127) // 128) * 128

    x1p = jnp.pad(x1, ((0, n_pad - N), (0, 0)))
    x2p = jnp.pad(x2, ((0, n_pad - N), (0, 0)))

    # One-time weight/bias preprocessing (contraction dim leading, padded OUT).
    w2d = jnp.transpose(weight, (1, 2, 0)).reshape(K, out_f)
    w2d = jnp.pad(w2d, ((0, 0), (0, out_p - out_f))).astype(dtype)
    b2d = jnp.pad(bias.reshape(1, out_f).astype(jnp.float32),
                  ((0, 0), (0, out_p - out_f)))

    # One-hot expansion operators (constants; tiny, stay VMEM resident).
    k_idx = jnp.arange(K)
    e1 = (k_idx[None, :] // in2 == jnp.arange(in1)[:, None]).astype(dtype)
    e2 = (k_idx[None, :] % in2 == jnp.arange(in2)[:, None]).astype(dtype)

    grid = (n_pad // tn,)
    out = pl.pallas_call(
        bilinear_kernel,
        out_shape=jax.ShapeDtypeStruct((n_pad, out_p), dtype),
        grid_spec=pltpu.PrefetchScalarGridSpec(
            num_scalar_prefetch=0,
            grid=grid,
            in_specs=[
                pl.BlockSpec((tn, in1), lambda n: (n, 0)),    # x1 tile
                pl.BlockSpec((tn, in2), lambda n: (n, 0)),    # x2 tile
                pl.BlockSpec((in1, K), lambda n: (0, 0)),     # e1 (resident)
                pl.BlockSpec((in2, K), lambda n: (0, 0)),     # e2 (resident)
                pl.BlockSpec((K, out_p), lambda n: (0, 0)),   # W2d (resident)
                pl.BlockSpec((1, out_p), lambda n: (0, 0)),   # bias (resident)
            ],
            out_specs=pl.BlockSpec((tn, out_p), lambda n: (n, 0)),
        ),
        compiler_params=pltpu.CompilerParams(
            dimension_semantics=("parallel",),
        ),
    )(x1p, x2p, e1, e2, w2d, b2d)

    return out[:N, :out_f]


if __name__ == "__main__":
    # nn.Bilinear(20, 30, 40) applied to a small ragged batch (exercises
    # batch padding + multi-tile grid with tile_n=64).
    N, IN1, IN2, OUT = 100, 20, 30, 40

    key = jax.random.PRNGKey(0)
    k_x1, k_x2, k_w, k_b = jax.random.split(key, 4)

    # Deterministic parameter init mirroring Bilinear.reset_parameters():
    # uniform(-stdv, stdv) with stdv = 1 / sqrt(in1_features).
    stdv = 1.0 / math.sqrt(IN1)
    weight = jax.random.uniform(
        k_w, (OUT, IN1, IN2), minval=-stdv, maxval=stdv, dtype=jnp.float32)
    bias = jax.random.uniform(
        k_b, (OUT,), minval=-stdv, maxval=stdv, dtype=jnp.float32)

    x1 = jax.random.normal(k_x1, (N, IN1), dtype=jnp.float32)
    x2 = jax.random.normal(k_x2, (N, IN2), dtype=jnp.float32)

    y = bilinear(x1, x2, weight, bias, tile_n=64)
    y = jax.block_until_ready(y)

    # Pure-JAX reference: y[n,o] = sum_{i,j} x1[n,i] W[o,i,j] x2[n,j] + b[o]
    y_ref = jnp.einsum("ni,oij,nj->no", x1, weight, x2) + bias
    assert y.shape == (N, OUT)
    assert jnp.allclose(y, y_ref, atol=1e-4, rtol=1e-4)

    print("KERNEL_OK")
</pallas_src>

<mosaic_0001>
module attributes {stable_mosaic.version = 11 : i64} {
  func.func @bilinear_kernel(%arg0: i32, %arg1: memref<64x20xf32, #tpu.memory_space<vmem>>, %arg2: memref<64x30xf32, #tpu.memory_space<vmem>>, %arg3: memref<20x600xf32, #tpu.memory_space<vmem>>, %arg4: memref<30x600xf32, #tpu.memory_space<vmem>>, %arg5: memref<600x128xf32, #tpu.memory_space<vmem>>, %arg6: memref<1x128xf32, #tpu.memory_space<vmem>>, %arg7: memref<64x128xf32, #tpu.memory_space<vmem>>) attributes {dimension_semantics = [#tpu.dimension_semantics<parallel>], iteration_bounds = array<i64: 2>, scalar_prefetch = 0 : i64, scratch_operands = 0 : i64, tpu.core_type = #tpu.core_type<tc>, window_params = [{transform_indices = @transform_0, window_bounds = array<i64: 64, 20>}, {transform_indices = @transform_1, window_bounds = array<i64: 64, 30>}, {pipeline_mode = #tpu.pipeline_mode<synchronous>, transform_indices = @transform_2, window_bounds = array<i64: 20, 600>}, {pipeline_mode = #tpu.pipeline_mode<synchronous>, transform_indices = @transform_3, window_bounds = array<i64: 30, 600>}, {pipeline_mode = #tpu.pipeline_mode<synchronous>, transform_indices = @transform_4, window_bounds = array<i64: 600, 128>}, {pipeline_mode = #tpu.pipeline_mode<synchronous>, transform_indices = @transform_5, window_bounds = array<i64: 1, 128>}, {transform_indices = @transform_6, window_bounds = array<i64: 64, 128>}]} {
    %c0 = arith.constant 0 : index
    %c0_0 = arith.constant 0 : index
    %0 = vector.load %arg1[%c0, %c0_0] : memref<64x20xf32, #tpu.memory_space<vmem>>, vector<64x20xf32>
    %c0_1 = arith.constant 0 : index
    %c0_2 = arith.constant 0 : index
    %1 = vector.load %arg3[%c0_1, %c0_2] : memref<20x600xf32, #tpu.memory_space<vmem>>, vector<20x600xf32>
    %cst = arith.constant dense<0.000000e+00> : vector<64x600xf32>
    %2 = tpu.matmul %0, %1, %cst {dimension_numbers = #tpu.dot_dimension_numbers<[1], [0], [0], [1], [0, 0, 1, 1], [], []>} : vector<64x20xf32>, vector<20x600xf32>, vector<64x600xf32> -> vector<64x600xf32>
    %c0_3 = arith.constant 0 : index
    %c0_4 = arith.constant 0 : index
    %3 = vector.load %arg2[%c0_3, %c0_4] : memref<64x30xf32, #tpu.memory_space<vmem>>, vector<64x30xf32>
    %c0_5 = arith.constant 0 : index
    %c0_6 = arith.constant 0 : index
    %4 = vector.load %arg4[%c0_5, %c0_6] : memref<30x600xf32, #tpu.memory_space<vmem>>, vector<30x600xf32>
    %cst_7 = arith.constant dense<0.000000e+00> : vector<64x600xf32>
    %5 = tpu.matmul %3, %4, %cst_7 {dimension_numbers = #tpu.dot_dimension_numbers<[1], [0], [0], [1], [0, 0, 1, 1], [], []>} : vector<64x30xf32>, vector<30x600xf32>, vector<64x600xf32> -> vector<64x600xf32>
    %6 = arith.mulf %2, %5 : vector<64x600xf32>
    %c0_8 = arith.constant 0 : index
    %c0_9 = arith.constant 0 : index
    %7 = vector.load %arg5[%c0_8, %c0_9] : memref<600x128xf32, #tpu.memory_space<vmem>>, vector<600x128xf32>
    %cst_10 = arith.constant dense<0.000000e+00> : vector<64x128xf32>
    %8 = tpu.matmul %6, %7, %cst_10 {dimension_numbers = #tpu.dot_dimension_numbers<[1], [0], [0], [1], [0, 0, 1, 1], [], []>} : vector<64x600xf32>, vector<600x128xf32>, vector<64x128xf32> -> vector<64x128xf32>
    %c0_11 = arith.constant 0 : index
    %c0_12 = arith.constant 0 : index
    %9 = vector.load %arg6[%c0_11, %c0_12] : memref<1x128xf32, #tpu.memory_space<vmem>>, vector<1x128xf32>
    %10 = vector.broadcast %9 : vector<1x128xf32> to vector<64x128xf32>
    %11 = arith.addf %8, %10 : vector<64x128xf32>
    %c0_13 = arith.constant 0 : index
    %c0_14 = arith.constant 0 : index
    %12 = vector.load %arg7[%c0_13, %c0_14] : memref<64x128xf32, #tpu.memory_space<vmem>>, vector<64x128xf32>
    tpu.vector_store %arg7[%c0_13, %c0_14], %11 {strides = array<i32>} : memref<64x128xf32, #tpu.memory_space<vmem>>, vector<64x128xf32>,
    return
  }
  func.func @transform_0(%arg0: i32) -> (i32, i32) {
    %c0_i32 = arith.constant 0 : i32
    %c0_i32_0 = arith.constant 0 : i32
    return %arg0, %c0_i32 : i32, i32
  }
  func.func @transform_1(%arg0: i32) -> (i32, i32) {
    %c0_i32 = arith.constant 0 : i32
    %c0_i32_0 = arith.constant 0 : i32
    return %arg0, %c0_i32 : i32, i32
  }
  func.func @transform_2(%arg0: i32) -> (i32, i32) {
    %c0_i32 = arith.constant 0 : i32
    %c0_i32_0 = arith.constant 0 : i32
    %c0_i32_1 = arith.constant 0 : i32
    return %c0_i32, %c0_i32_0 : i32, i32
  }
  func.func @transform_3(%arg0: i32) -> (i32, i32) {
    %c0_i32 = arith.constant 0 : i32
    %c0_i32_0 = arith.constant 0 : i32
    %c0_i32_1 = arith.constant 0 : i32
    return %c0_i32, %c0_i32_0 : i32, i32
  }
  func.func @transform_4(%arg0: i32) -> (i32, i32) {
    %c0_i32 = arith.constant 0 : i32
    %c0_i32_0 = arith.constant 0 : i32
    %c0_i32_1 = arith.constant 0 : i32
    return %c0_i32, %c0_i32_0 : i32, i32
  }
  func.func @transform_5(%arg0: i32) -> (i32, i32) {
    %c0_i32 = arith.constant 0 : i32
    %c0_i32_0 = arith.constant 0 : i32
    %c0_i32_1 = arith.constant 0 : i32
    return %c0_i32, %c0_i32_0 : i32, i32
  }
  func.func @transform_6(%arg0: i32) -> (i32, i32) {
    %c0_i32 = arith.constant 0 : i32
    %c0_i32_0 = arith.constant 0 : i32
    return %arg0, %c0_i32 : i32, i32
  }
}

</mosaic_0001>

<bundles_post_ra>
// kernel: bilinear.1
= control target key start
LH: loop header
LB: loop body
LE: loop exit
PB: predicated region body
PF: predicated region fallthrough
CT: control target
= control target key end

     0   :  { %s1969_s21 = smov 0   ;;  %s2570_s0 = inlined_call_operand.vmem [shape: f32[128,20], index: 0, kind: input, shape index: {}]   ;;  %s2571_s1 = inlined_call_operand.vmem [shape: f32[128,30], index: 1, kind: input, shape index: {}]   ;;  %s2572_s2 = inlined_call_operand.vmem [shape: f32[20,600], index: 2, kind: input, shape index: {}]   ;;  %s2573_s3 = inlined_call_operand.vmem [shape: f32[30,600], index: 3, kind: input, shape index: {}]   ;;  %s2574_s4 = inlined_call_operand.vmem [shape: f32[600,128], index: 4, kind: input, shape index: {}]   ;;  %s2575_s5 = inlined_call_operand.vmem [shape: f32[1,128], index: 5, kind: input, shape index: {}]   ;;  %s2576_s6 = inlined_call_operand.vmem [shape: f32[128,128], index: 6, kind: output, shape index: {}]  }
   0x1 LB: > { %s1610_s22 = sadd.s32 4294967295, %s1931_s21   ;;  %p1614_p0 = scmp.ge.s32.totalorder %s1931_s21, 1  ;;  %s1931_s21 = sphi %s1969_s21, %s16_s21  }
   0x2   : > { %p224_p1 = scmp.lt.s32.totalorder %s1931_s21, 3 }
   0x4   : > { %p225_p2 = pnand %p1614_p0, %p224_p1 }
   0x5   : > { %s1615_s17 = sshll.u32 (!%p225_p2), %s1610_s22, 3 }
   0x6   : > { %228 = sbr.rel (%p225_p2) target bundleno = 497 (0x1f1), region = 44  ;;  %p260_p3 = scmp.lt.s32.totalorder (!%p225_p2), %s1615_s17, 15 }
   0xb   : > { %v296_v0 = vld [vmem:[%s2572_s2 + $0x58] sm:$0xf]  ;;  %vm325_vm0 = vcmask 1043456   ;;  %v295_v1 = vld [vmem:[%s2572_s2 + $0x50] sm:$0xf]  ;;  %v290_v5 = vld [vmem:[%s2572_s2 + $0x28] sm:$0xff] }
   0xc   : > { %v291_v2 = vld [vmem:[%s2572_s2 + $0x30] sm:$0xff]  ;;  %1621 = vmatprep.subr.msk.mxu0 %vm325_vm0, %v296_v0  ;;  %v298_v3 = vld [vmem:[%s2572_s2 + $0x68] sm:$0xf]  ;;  %v297_v4 = vld [vmem:[%s2572_s2 + $0x60] sm:$0xf]  ;;  %s2578_s17 = smov (!%p260_p3, %s1615_s17), 15 }
   0xd   : > { %1622 = vmatpush1.msk.msra.mxu0 %vm325_vm0, %v295_v1  ;;  %1631 = vmatprep.subr.msk.mxu1 %vm325_vm0, %v298_v3  ;;  %v293_v6 = vld [vmem:[%s2572_s2 + $0x40] sm:$0xff]  ;;  %v286_v7 = vld [vmem:[%s2572_s2 + $0x8] sm:$0xff]  ;;  %v292_v8 = vld [vmem:[%s2572_s2 + $0x38] sm:$0xff]  ;;  %vm725_vm1 = vcmask 1045504   ;;  %v1933_v14 = vmov 0.0   ;;  %s2024_s29 = sshll.u32 %s2578_s17, 3 }
   0xe   : > { %369 = vmatprep.subr.mxu0 %v291_v2  ;;  %1632 = vmatpush1.msk.msra.mxu1 %vm325_vm0, %v297_v4  ;;  %v285_v9 = vld [vmem:[%s2572_s2] sm:$0xff]  ;;  %v288_v10 = vld [vmem:[%s2572_s2 + $0x18] sm:$0xff]  ;;  %v287_v11 = vld [vmem:[%s2572_s2 + $0x10] sm:$0xff]  ;;  %vm300_vm2 = vcmask 162816   ;;  %s2032_s8 = scalar_lea.vmem %s2570_s0, %s2024_s29  ;;  %s2116_s12 = scalar_lea.vmem %s2571_s1, %s2024_s29  ;;  %vm700_vm3 = vcmask 244736   ;;  %vm1194_vm4 = vcmask 719872  }
   0xf   : > { %370 = vmatpush1.msra.mxu0 %v290_v5  ;;  %482 = vmatprep.subr.mxu1 %v293_v6  ;;  %v299_v12 = vld [vmem:[%s2572_s2 + $0x70] sm:$0xf]  ;;  %v696_v13 = vld [vmem:[%s2573_s3 + $0x80] sm:$0x3f]  ;;  %v695_v16 = vld [vmem:[%s2573_s3 + $0x78] sm:$0x3f]  ;;  %s2557_s11 = scalar_lea.vmem %s2576_s6, %s2024_s29 }
  0x10   : > { %371 = vmatprep.subr.mxu0 %v286_v7  ;;  %483 = vmatpush1.msra.mxu1 %v292_v8  ;;  %v2035_v15 = vld [vmem:[%s2032_s8] sm:$0xff]  ;;  %v294_v17 = vld [vmem:[%s2572_s2 + $0x48] sm:$0xff]  ;;  %v691_v18 = vld [vmem:[%s2573_s3 + $0x58] sm:$0xff] }
  0x11   : > { %372 = vmatpush1.msra.mxu0 %v285_v9  ;;  %484 = vmatprep.subr.mxu1 %v288_v10  ;;  %v278_v19 = vld [vmem:[%s2032_s8 + $0x8] sm:$0xff]  ;;  %v690_v20 = vld [vmem:[%s2573_s3 + $0x50] sm:$0xff]  ;;  %v289_v22 = vld [vmem:[%s2572_s2 + $0x20] sm:$0xff] }
  0x12   : > { %405 = vmatprep.mubr.f32.mxu0 %v1933_v14  ;;  %485 = vmatpush1.msra.mxu1 %v287_v11  ;;  %v686_v21 = vld [vmem:[%s2573_s3 + $0x30] sm:$0xff]  ;;  %v685_v24 = vld [vmem:[%s2573_s3 + $0x28] sm:$0xff]  ;;  %v280_v27 = vld [vmem:[%s2032_s8 + $0x18] sm:$0xff] }
  0x13   : > { %518 = vmatprep.mubr.f32.mxu1 %v1933_v14  ;;  %1844 = vmatprep.subr.msk.mxu0 %vm325_vm0, %v299_v12  ;;  %v279_v23 = vld [vmem:[%s2032_s8 + $0x10] sm:$0xff]  ;;  %v681_v25 = vld [vmem:[%s2573_s3 + $0x8] sm:$0xff]  ;;  %v680_v28 = vld [vmem:[%s2573_s3] sm:$0xff] }
  0x14   : > { %1650 = vmatprep.subr.msk.mxu1 %vm725_vm1, %v696_v13  ;;  %1623 = vmatmul.mubr.msk.f32.vlgmr.msra.gmra.mxu0 %vm300_vm2, %v2035_v15  ;;  %v698_v26 = vld [vmem:[%s2573_s3 + $0x90] sm:$0x3f]  ;;  %v699_v29 = vld [vmem:[%s2573_s3 + $0x98] sm:$0x3f]  ;;  %v281_v30 = vld [vmem:[%s2032_s8 + $0x20] sm:$0xff] }
  0x15   : > { %1633 = vmatmul.mubr.msk.f32.vlgmr.msra.gmra.mxu1 %vm300_vm2, %v2035_v15  ;;  %1845 = vmatpush3.msk.msra.mxu0 %vm325_vm0, %v299_v12  ;;  %v282_v31 = vld [vmem:[%s2032_s8 + $0x28] sm:$0xff]  ;;  %v283_v32 = vld [vmem:[%s2032_s8 + $0x30] sm:$0xff]  ;;  %v284_v33 = vld [vmem:[%s2032_s8 + $0x38] sm:$0xff] }
  0x16   : > { %411 = vmatprep.mubr.f32.mxu0 %v1933_v14  ;;  %524 = vmatprep.mubr.f32.mxu1 %v1933_v14  ;;  %v2124_v34 = vld [vmem:[%s2116_s12] sm:$0xff]  ;;  %v697_v35 = vld [vmem:[%s2573_s3 + $0x88] sm:$0x3f]  ;;  %v694_v40 = vld [vmem:[%s2573_s3 + $0x70] sm:$0xff] }
  0x17   : > { %1651 = vmatpush1.msk.msra.mxu1 %vm725_vm1, %v695_v16  ;;  %1846 = vmatprep.subr.mxu0 %v294_v17  ;;  %v693_v36 = vld [vmem:[%s2573_s3 + $0x68] sm:$0xff]  ;;  %v692_v37 = vld [vmem:[%s2573_s3 + $0x60] sm:$0xff]  ;;  %v687_v41 = vld [vmem:[%s2573_s3 + $0x38] sm:$0xff] }
  0x18   : > { %767 = vmatprep.subr.mxu1 %v691_v18  ;;  %1624 = vmatmul.mubr.msk.f32.gmra.mxu0 %vm300_vm2, %v278_v19  ;;  %v673_v38 = vld [vmem:[%s2116_s12 + $0x8] sm:$0xff]  ;;  %v688_v39 = vld [vmem:[%s2573_s3 + $0x40] sm:$0xff]  ;;  %v674_v42 = vld [vmem:[%s2116_s12 + $0x10] sm:$0xff] }
  0x19   : > { %1634 = vmatmul.mubr.msk.f32.gmra.mxu1 %vm300_vm2, %v278_v19  ;;  %417 = vmatprep.mubr.f32.mxu0 %v1933_v14  ;;  %v683_v43 = vld [vmem:[%s2573_s3 + $0x18] sm:$0xff]  ;;  %v689_v44 = vld [vmem:[%s2573_s3 + $0x48] sm:$0xff]  ;;  %v682_v45 = vld [vmem:[%s2573_s3 + $0x10] sm:$0xff] }
  0x1a   : > { %530 = vmatprep.mubr.f32.mxu1 %v1933_v14  ;;  %1847 = vmatpush3.msra.mxu0 %v294_v17  ;;  %v675_v46 = vld [vmem:[%s2116_s12 + $0x18] sm:$0xff]  ;;  %v684_v47 = vld [vmem:[%s2573_s3 + $0x20] sm:$0xff]  ;;  %v677_v49 = vld [vmem:[%s2116_s12 + $0x28] sm:$0xff] }
  0x1b   : > { %768 = vmatpush1.msra.mxu1 %v690_v20  ;;  %1848 = vmatprep.subr.mxu0 %v289_v22  ;;  %v676_v48 = vld [vmem:[%s2116_s12 + $0x20] sm:$0xff]  ;;  %v678_v50 = vld [vmem:[%s2116_s12 + $0x30] sm:$0xff]  ;;  %v679_v51 = vld [vmem:[%s2116_s12 + $0x38] sm:$0xff] }
  0x1c   : > { %769 = vmatprep.subr.mxu1 %v686_v21  ;;  %1625 = vmatmul.mubr.msk.f32.gmra.mxu0 %vm300_vm2, %v279_v23  ;;  %v1143_v52 = vld [vmem:[%s2574_s4 + $0xf8] sm:$0xff]  ;;  %v1142_v54 = vld [vmem:[%s2574_s4 + $0xf0] sm:$0xff]  ;;  %v1141_v56 = vld [vmem:[%s2574_s4 + $0xe8] sm:$0xff] }
  0x1d   : > { %1635 = vmatmul.mubr.msk.f32.gmra.mxu1 %vm300_vm2, %v279_v23  ;;  %423 = vmatprep.mubr.f32.mxu0 %v1933_v14  ;;  %v1127_v53 = vld [vmem:[%s2574_s4 + $0x78] sm:$0xff]  ;;  %v1126_v55 = vld [vmem:[%s2574_s4 + $0x70] sm:$0xff]  ;;  %v1125_v57 = vld [vmem:[%s2574_s4 + $0x68] sm:$0xff] }
  0x1e   : > { %536 = vmatprep.mubr.f32.mxu1 %v1933_v14  ;;  %770 = vmatpush1.msra.mxu1 %v685_v24  ;;  %v1140_v58 = vld [vmem:[%s2574_s4 + $0xe0] sm:$0xff]  ;;  %v1139_v60 = vld [vmem:[%s2574_s4 + $0xd8] sm:$0xff]  ;;  %v1138_v62 = vld [vmem:[%s2574_s4 + $0xd0] sm:$0xff] }
  0x1f   : > { %1849 = vmatpush3.msra.mxu0 %v289_v22  ;;  %771 = vmatprep.subr.mxu1 %v681_v25  ;;  %v1124_v59 = vld [vmem:[%s2574_s4 + $0x60] sm:$0xff]  ;;  %v1123_v61 = vld [vmem:[%s2574_s4 + $0x58] sm:$0xff]  ;;  %v1122_v63 = vld [vmem:[%s2574_s4 + $0x50] sm:$0xff] }
  0x20   : > { %1660 = vmatprep.subr.msk.mxu0 %vm725_vm1, %v698_v26  ;;  %1626 = vmatmul.mubr.msk.f32.gmra.mxu0 %vm300_vm2, %v280_v27  ;;  %v1137_v0 = vld [vmem:[%s2574_s4 + $0xc8] sm:$0xff]  ;;  %v1136_v2 = vld [vmem:[%s2574_s4 + $0xc0] sm:$0xff]  ;;  %v1175_v4 = vld [vmem:[%s2574_s4 + $0x1f8] sm:$0xff] }
  0x21   : > { %1636 = vmatmul.mubr.msk.f32.gmra.mxu1 %vm300_vm2, %v280_v27  ;;  %429 = vmatprep.mubr.f32.mxu0 %v1933_v14  ;;  %v1121_v1 = vld [vmem:[%s2574_s4 + $0x48] sm:$0xff]  ;;  %v1120_v3 = vld [vmem:[%s2574_s4 + $0x40] sm:$0xff]  ;;  %v1135_v5 = vld [vmem:[%s2574_s4 + $0xb8] sm:$0xff] }
  0x22   : > { %542 = vmatprep.mubr.f32.mxu1 %v1933_v14  ;;  %772 = vmatpush1.msra.mxu1 %v680_v28  ;;  %v1159_v6 = vld [vmem:[%s2574_s4 + $0x178] sm:$0xff]  ;;  %v1174_v8 = vld [vmem:[%s2574_s4 + $0x1f0] sm:$0xff]  ;;  %v1173_v12 = vld [vmem:[%s2574_s4 + $0x1e8] sm:$0xff] }
  0x23   : > { %1862 = vmatprep.subr.msk.mxu1 %vm725_vm1, %v699_v29  ;;  %v1119_v7 = vld [vmem:[%s2574_s4 + $0x38] sm:$0xff]  ;;  %v1134_v9 = vld [vmem:[%s2574_s4 + $0xb0] sm:$0xff]  ;;  %v1133_v13 = vld [vmem:[%s2574_s4 + $0xa8] sm:$0xff] }
  0x24   : > { %1627 = vmatmul.mubr.msk.f32.gmra.mxu0 %vm300_vm2, %v281_v30  ;;  %v1158_v10 = vld [vmem:[%s2574_s4 + $0x170] sm:$0xff]  ;;  %v1172_v16 = vld [vmem:[%s2574_s4 + $0x1e0] sm:$0xff]  ;;  %v1171_v20 = vld [vmem:[%s2574_s4 + $0x1d8] sm:$0xff] }
  0x25   : > { %1637 = vmatmul.mubr.msk.f32.gmra.mxu1 %vm300_vm2, %v281_v30  ;;  %435 = vmatprep.mubr.f32.mxu0 %v1933_v14  ;;  %v1118_v11 = vld [vmem:[%s2574_s4 + $0x30] sm:$0xff]  ;;  %v1132_v17 = vld [vmem:[%s2574_s4 + $0xa0] sm:$0xff]  ;;  %v1131_v21 = vld [vmem:[%s2574_s4 + $0x98] sm:$0xff] }
  0x26   : > { %548 = vmatprep.mubr.f32.mxu1 %v1933_v14  ;;  %v1156_v18 = vld [vmem:[%s2574_s4 + $0x160] sm:$0xff]  ;;  %v1155_v22 = vld [vmem:[%s2574_s4 + $0x158] sm:$0xff]  ;;  %v1170_v24 = vld [vmem:[%s2574_s4 + $0x1d0] sm:$0xff] }
  0x27   : > { %v1130_v25 = vld [vmem:[%s2574_s4 + $0x90] sm:$0xff]  ;;  %v1169_v28 = vld [vmem:[%s2574_s4 + $0x1c8] sm:$0xff] }
  0x28   : > { %1628 = vmatmul.mubr.msk.f32.gmra.mxu0 %vm300_vm2, %v282_v31  ;;  %v1154_v26 = vld [vmem:[%s2574_s4 + $0x150] sm:$0xff] }
  0x29   : > { %1638 = vmatmul.mubr.msk.f32.gmra.mxu1 %vm300_vm2, %v282_v31  ;;  %441 = vmatprep.mubr.f32.mxu0 %v1933_v14 }
  0x2a   : > { %554 = vmatprep.mubr.f32.mxu1 %v1933_v14 }
  0x2c   : > { %1629 = vmatmul.mubr.msk.f32.gmra.mxu0 %vm300_vm2, %v283_v32 }
  0x2d   : > { %1639 = vmatmul.mubr.msk.f32.gmra.mxu1 %vm300_vm2, %v283_v32  ;;  %447 = vmatprep.mubr.f32.mxu0 %v1933_v14 }
  0x2e   : > { %560 = vmatprep.mubr.f32.mxu1 %v1933_v14 }
  0x30   : > { %1630 = vmatmul.mubr.msk.f32.gmra.mxu0 %vm300_vm2, %v284_v33 }
  0x31   : > { %1640 = vmatmul.mubr.msk.f32.gmra.mxu1 %vm300_vm2, %v284_v33  ;;  %1850 = vmatprep.mubr.msk.f32.mxu0 %vm300_vm2, %v2035_v15  ;;  %v1117_v15 = vld [vmem:[%s2574_s4 + $0x28] sm:$0xff] }
  0x32   : > { %805 = vmatprep.mubr.f32.mxu1 %v1933_v14 }
  0x34   : > { %1851 = vmatmul.mubr.msk.f32.vlgmr.msra.gmra.mxu0 %vm300_vm2, %v278_v19  ;;  %v1116_v19 = vld [vmem:[%s2574_s4 + $0x20] sm:$0xff] }
  0x35   : > { %1652 = vmatmul.mubr.msk.f32.vlgmr.msra.gmra.mxu1 %vm700_vm3, %v2124_v34  ;;  %1661 = vmatpush1.msk.msra.mxu0 %vm725_vm1, %v697_v35  ;;  %v1112_v35 = vld [vmem:[%s2574_s4] sm:$0xff] }
  0x36   : > { %1853 = vmatprep.mubr.msk.f32.mxu0 %vm300_vm2, %v279_v23  ;;  %811 = vmatprep.mubr.f32.mxu1 %v1933_v14  ;;  %v1115_v23 = vld [vmem:[%s2574_s4 + $0x18] sm:$0xff] }
  0x37   : > { %880 = vmatprep.subr.mxu0 %v693_v36  ;;  %1863 = vmatpush3.msk.msra.mxu1 %vm725_vm1, %v699_v29  ;;  %v1129_v29 = vld [vmem:[%s2574_s4 + $0x88] sm:$0xff]  ;;  %v1167_v36 = vld [vmem:[%s2574_s4 + $0x1b8] sm:$0xff] }
  0x38   : > { %881 = vmatpush1.msra.mxu0 %v692_v37  ;;  %1864 = vmatprep.subr.mxu1 %v694_v40  ;;  %v1151_v37 = vld [vmem:[%s2574_s4 + $0x138] sm:$0xff] }
  0x39   : > { %1854 = vmatmul.mubr.msk.f32.gmra.mxu0 %vm300_vm2, %v280_v27  ;;  %1653 = vmatmul.mubr.msk.f32.gmra.mxu1 %vm700_vm3, %v673_v38  ;;  %v1114_v27 = vld [vmem:[%s2574_s4 + $0x10] sm:$0xff] }
  0x3a   : > { %1856 = vmatprep.mubr.msk.f32.mxu0 %vm300_vm2, %v281_v30  ;;  %817 = vmatprep.mubr.f32.mxu1 %v1933_v14  ;;  %v1153_v30 = vld [vmem:[%s2574_s4 + $0x148] sm:$0xff] }
  0x3b   : > { %882 = vmatprep.subr.mxu0 %v688_v39  ;;  %1865 = vmatpush3.msra.mxu1 %v694_v40  ;;  %v1150_v39 = vld [vmem:[%s2574_s4 + $0x130] sm:$0xff] }
  0x3c   : > { %883 = vmatpush1.msra.mxu0 %v687_v41  ;;  %1866 = vmatprep.subr.mxu1 %v689_v44  ;;  %v2373_v40 = vld [vmem:[%s2574_s4 + $0x250] sm:$0xff]  ;;  %v1165_v41 = vld [vmem:[%s2574_s4 + $0x1a8] sm:$0xff] }
  0x3d   : > { %1857 = vmatmul.mubr.msk.f32.gmra.mxu0 %vm300_vm2, %v282_v31  ;;  %1654 = vmatmul.mubr.msk.f32.gmra.mxu1 %vm700_vm3, %v674_v42  ;;  %v1113_v31 = vld [vmem:[%s2574_s4 + $0x8] sm:$0xff] }
  0x3e   : > { %1859 = vmatprep.mubr.msk.f32.mxu0 %vm300_vm2, %v283_v32  ;;  %823 = vmatprep.mubr.f32.mxu1 %v1933_v14  ;;  %v1168_v32 = vld [vmem:[%s2574_s4 + $0x1c0] sm:$0xff] }
  0x3f   : > { %884 = vmatprep.subr.mxu0 %v683_v43  ;;  %1867 = vmatpush3.msra.mxu1 %v689_v44  ;;  %v1164_v43 = vld [vmem:[%s2574_s4 + $0x1a0] sm:$0xff] }
  0x40   : > { %885 = vmatpush1.msra.mxu0 %v682_v45  ;;  %1868 = vmatprep.subr.mxu1 %v684_v47  ;;  %v1148_v44 = vld [vmem:[%s2574_s4 + $0x120] sm:$0xff]  ;;  %v1163_v45 = vld [vmem:[%s2574_s4 + $0x198] sm:$0xff] }
  0x41   : > { %1860 = vmatmul.mubr.msk.f32.gmra.mxu0 %vm300_vm2, %v284_v33  ;;  %1655 = vmatmul.mubr.msk.f32.gmra.mxu1 %vm700_vm3, %v675_v46  ;;  %v1128_v33 = vld [vmem:[%s2574_s4 + $0x80] sm:$0xff] }
  0x42   : > { %829 = vmatprep.mubr.f32.mxu1 %v1933_v14  ;;  %918 = vmatprep.mubr.f32.mxu0 %v1933_v14 }
  0x43   : > { %1869 = vmatpush3.msra.mxu1 %v684_v47  ;;  %1713 = vmatprep.subr.mxu0 %v1143_v52  ;;  %v1162_v47 = vld [vmem:[%s2574_s4 + $0x190] sm:$0xff]  ;;  %v1144_v52 = vld [vmem:[%s2574_s4 + $0x100] sm:$0xff] }
  0x44   : > { %1769 = vmatprep.subr.mxu1 %v1175_v4 }
  0x45   : > { %1656 = vmatmul.mubr.msk.f32.gmra.mxu1 %vm700_vm3, %v676_v48  ;;  %1662 = vmatmul.mubr.msk.f32.vlgmr.msra.gmra.mxu0 %vm700_vm3, %v2124_v34 }
  0x46   : > { %835 = vmatprep.mubr.f32.mxu1 %v1933_v14  ;;  %924 = vmatprep.mubr.f32.mxu0 %v1933_v14 }
  0x47   : > { %1714 = vmatpush3.msra.mxu0 %v1127_v53 }
  0x48   : > { %1715 = vmatprep.subr.mxu0 %v1142_v54 }
  0x49   : > { %1657 = vmatmul.mubr.msk.f32.gmra.mxu1 %vm700_vm3, %v677_v49  ;;  %1663 = vmatmul.mubr.msk.f32.gmra.mxu0 %vm700_vm3, %v673_v38 }
  0x4a   : > { %841 = vmatprep.mubr.f32.mxu1 %v1933_v14  ;;  %930 = vmatprep.mubr.f32.mxu0 %v1933_v14 }
  0x4b   : > { %1716 = vmatpush3.msra.mxu0 %v1126_v55 }
  0x4c   : > { %1717 = vmatprep.subr.mxu0 %v1141_v56 }
  0x4d   : > { %1658 = vmatmul.mubr.msk.f32.gmra.mxu1 %vm700_vm3, %v678_v50  ;;  %1664 = vmatmul.mubr.msk.f32.gmra.mxu0 %vm700_vm3, %v674_v42 }
  0x4e   : > { %847 = vmatprep.mubr.f32.mxu1 %v1933_v14  ;;  %936 = vmatprep.mubr.f32.mxu0 %v1933_v14 }
  0x4f   : > { %1718 = vmatpush3.msra.mxu0 %v1125_v57 }
  0x50   : > { %1719 = vmatprep.subr.mxu0 %v1140_v58 }
  0x51   : > { %1659 = vmatmul.mubr.msk.f32.gmra.mxu1 %vm700_vm3, %v679_v51  ;;  %1665 = vmatmul.mubr.msk.f32.gmra.mxu0 %vm700_vm3, %v675_v46 }
  0x52   : > { %942 = vmatprep.mubr.f32.mxu0 %v1933_v14  ;;  %1870 = vmatprep.mubr.msk.f32.mxu1 %vm700_vm3, %v2124_v34  ;;  %v1152_v34 = vld [vmem:[%s2574_s4 + $0x140] sm:$0xff] }
  0x53   : > { %1720 = vmatpush3.msra.mxu0 %v1124_v59 }
  0x54   : > { %1721 = vmatprep.subr.mxu0 %v1139_v60 }
  0x55   : > { %1666 = vmatmul.mubr.msk.f32.gmra.mxu0 %vm700_vm3, %v676_v48  ;;  %1871 = vmatmul.mubr.msk.f32.vlgmr.msra.gmra.mxu1 %vm700_vm3, %v673_v38  ;;  %v1166_v38 = vld [vmem:[%s2574_s4 + $0x1b0] sm:$0xff] }
  0x56   : > { %948 = vmatprep.mubr.f32.mxu0 %v1933_v14  ;;  %1873 = vmatprep.mubr.msk.f32.mxu1 %vm700_vm3, %v674_v42  ;;  %v1149_v42 = vld [vmem:[%s2574_s4 + $0x128] sm:$0xff] }
  0x57   : > { %1722 = vmatpush3.msra.mxu0 %v1123_v61  ;;  %1770 = vmatpush3.msra.mxu1 %v1159_v6 }
  0x58   : > { %1723 = vmatprep.subr.mxu0 %v1138_v62  ;;  %1771 = vmatprep.subr.mxu1 %v1174_v8 }
  0x59   : > { %1667 = vmatmul.mubr.msk.f32.gmra.mxu0 %vm700_vm3, %v677_v49  ;;  %1874 = vmatmul.mubr.msk.f32.gmra.mxu1 %vm700_vm3, %v675_v46  ;;  %v1147_v46 = vld [vmem:[%s2574_s4 + $0x118] sm:$0xff] }
  0x5a   : > { %954 = vmatprep.mubr.f32.mxu0 %v1933_v14  ;;  %1876 = vmatprep.mubr.msk.f32.mxu1 %vm700_vm3, %v676_v48  ;;  %v1146_v48 = vld [vmem:[%s2574_s4 + $0x110] sm:$0xff] }
  0x5b   : > { %1724 = vmatpush3.msra.mxu0 %v1122_v63  ;;  %1772 = vmatpush3.msra.mxu1 %v1158_v10 }
  0x5c   : > { %1725 = vmatprep.subr.mxu0 %v1137_v0  ;;  %1773 = vmatprep.subr.mxu1 %v1173_v12 }
  0x5d   : > { %1668 = vmatmul.mubr.msk.f32.gmra.mxu0 %vm700_vm3, %v678_v50  ;;  %1877 = vmatmul.mubr.msk.f32.gmra.mxu1 %vm700_vm3, %v677_v49  ;;  %v1161_v49 = vld [vmem:[%s2574_s4 + $0x188] sm:$0xff] }
  0x5e   : > { %960 = vmatprep.mubr.f32.mxu0 %v1933_v14  ;;  %1879 = vmatprep.mubr.msk.f32.mxu1 %vm700_vm3, %v678_v50  ;;  %v1157_v14 = vld [vmem:[%s2574_s4 + $0x168] sm:$0xff] }
  0x5f   : > { %1726 = vmatpush3.msra.mxu0 %v1121_v1  ;;  %1774 = vmatpush3.msra.mxu1 %v1157_v14  ;;  %v1145_v50 = vld [vmem:[%s2574_s4 + $0x108] sm:$0xff] }
  0x60   : > { %1727 = vmatprep.subr.mxu0 %v1136_v2  ;;  %1775 = vmatprep.subr.mxu1 %v1172_v16 }
  0x61   : > { %1669 = vmatmul.mubr.msk.f32.gmra.mxu0 %vm700_vm3, %v679_v51  ;;  %1880 = vmatmul.mubr.msk.f32.gmra.mxu1 %vm700_vm3, %v679_v51  ;;  %v1160_v51 = vld [vmem:[%s2574_s4 + $0x180] sm:$0xff] }
  0x62   : > { %1728 = vmatpush3.msra.mxu0 %v1120_v3  ;;  %1776 = vmatpush3.msra.mxu1 %v1156_v18 }
  0x63   : > { %1729 = vmatprep.subr.mxu0 %v1135_v5  ;;  %1777 = vmatprep.subr.mxu1 %v1171_v20 }
  0x64   : > { %1730 = vmatpush3.msra.mxu0 %v1119_v7  ;;  %1778 = vmatpush3.msra.mxu1 %v1155_v22 }
  0x65   : > { %1731 = vmatprep.subr.mxu0 %v1134_v9  ;;  %1779 = vmatprep.subr.mxu1 %v1170_v24 }
  0x66   : > { %1732 = vmatpush3.msra.mxu0 %v1118_v11  ;;  %1780 = vmatpush3.msra.mxu1 %v1154_v26 }
  0x67   : > { %1733 = vmatprep.subr.mxu0 %v1133_v13  ;;  %1781 = vmatprep.subr.mxu1 %v1169_v28 }
  0x68   : > { %1734 = vmatpush3.msra.mxu0 %v1117_v15  ;;  %1782 = vmatpush3.msra.mxu1 %v1153_v30 }
  0x69   : > { %1735 = vmatprep.subr.mxu0 %v1132_v17  ;;  %1783 = vmatprep.subr.mxu1 %v1168_v32 }
  0x6a   : > { %1736 = vmatpush3.msra.mxu0 %v1116_v19  ;;  %1784 = vmatpush3.msra.mxu1 %v1152_v34 }
  0x6b   : > { %1737 = vmatprep.subr.mxu0 %v1131_v21  ;;  %1785 = vmatprep.subr.mxu1 %v1167_v36 }
  0x6c   : > { %1738 = vmatpush3.msra.mxu0 %v1115_v23  ;;  %1786 = vmatpush3.msra.mxu1 %v1151_v37  ;;  %v1183_v37 = vld [vmem:[%s2574_s4 + $0x238] sm:$0xff] }
  0x6d   : > { %1739 = vmatprep.subr.mxu0 %v1130_v25  ;;  %1787 = vmatprep.subr.mxu1 %v1166_v38 }
  0x6e   : > { %1740 = vmatpush3.msra.mxu0 %v1114_v27  ;;  %1788 = vmatpush3.msra.mxu1 %v1150_v39 }
  0x6f   : > { %1741 = vmatprep.subr.mxu0 %v1129_v29  ;;  %1789 = vmatprep.subr.mxu1 %v1165_v41  ;;  %v1185_v29 = vld [vmem:[%s2574_s4 + $0x248] sm:$0xff]  ;;  %v1182_v41 = vld [vmem:[%s2574_s4 + $0x230] sm:$0xff] }
  0x70   : > { %1742 = vmatpush3.msra.mxu0 %v1113_v31  ;;  %1790 = vmatpush3.msra.mxu1 %v1149_v42 }
  0x71   : > { %1743 = vmatprep.subr.mxu0 %v1128_v33  ;;  %1791 = vmatprep.subr.mxu1 %v1164_v43  ;;  %v1184_v33 = vld [vmem:[%s2574_s4 + $0x240] sm:$0xff] }
  0x72   : > { %1744 = vmatpush3.msra.mxu0 %v1112_v35  ;;  %1792 = vmatpush3.msra.mxu1 %v1148_v44 }
  0x73   : > { %1882 = vmatprep.subr.mxu0 %v2373_v40  ;;  %1793 = vmatprep.subr.mxu1 %v1163_v45  ;;  %v1181_v45 = vld [vmem:[%s2574_s4 + $0x228] sm:$0xff] }
  0x74   : > { %1794 = vmatpush3.msra.mxu1 %v1147_v46 }
  0x75   : > { %1795 = vmatprep.subr.mxu1 %v1162_v47 }
  0x76   : > { %1796 = vmatpush3.msra.mxu1 %v1146_v48 }
  0x77   : > { %1797 = vmatprep.subr.mxu1 %v1161_v49  ;;  %v1180_v49 = vld [vmem:[%s2574_s4 + $0x220] sm:$0xff] }
  0x78   : > { %1798 = vmatpush3.msra.mxu1 %v1145_v50 }
  0x79   : > { %1799 = vmatprep.subr.mxu1 %v1160_v51 }
  0x7a   : > { %1800 = vmatpush3.msra.mxu1 %v1144_v52 }
  0xd4   : > { %v407_v53 = vpop.f32.mrf.mxu0 }
  0xd5   : > { %v2412_v54 = vpop.f32.mrf.mxu1 }
  0xd6   : > { %v409_v55 = vpop.f32.mrf.mxu0 }
  0xd7   : > { %v2414_v56 = vpop.f32.mrf.mxu1 }
  0xd8   : > { %v413_v57 = vpop.f32.mrf.mxu0 }
  0xd9   : > { %v2416_v58 = vpop.f32.mrf.mxu1 }
  0xda   : > { %v415_v59 = vpop.f32.mrf.mxu0 }
  0xdb   : > { %v2418_v60 = vpop.f32.mrf.mxu1 }
  0xdc   : > { %v419_v61 = vpop.f32.mrf.mxu0 }
  0xdd   : > { %v2420_v62 = vpop.f32.mrf.mxu1 }
  0xde   : > { %v421_v63 = vpop.f32.mrf.mxu0 }
  0xdf   : > { %v2422_v0 = vpop.f32.mrf.mxu1 }
  0xe0   : > { %v2424_v1 = vpop.f32.mrf.mxu0 }
  0xe1   : > { %v2426_v2 = vpop.f32.mrf.mxu1 }
  0xe2   : > { %v427_v3 = vpop.f32.mrf.mxu0 }
  0xe3   : > { %v2428_v4 = vpop.f32.mrf.mxu1 }
  0xe4   : > { %v2430_v5 = vpop.f32.mrf.mxu0 }
  0xe5   : > { %v2432_v6 = vpop.f32.mrf.mxu1 }
  0xe6   : > { %v2434_v7 = vpop.f32.mrf.mxu0 }
  0xe7   : > { %v2436_v8 = vpop.f32.mrf.mxu1 }
  0xe8   : > { %v2438_v9 = vpop.f32.mrf.mxu0 }
  0xe9   : > { %v2440_v10 = vpop.f32.mrf.mxu1 }
  0xea   : > { %v2442_v11 = vpop.f32.mrf.mxu0 }
  0xeb   : > { %v2444_v12 = vpop.f32.mrf.mxu1 }
  0xec   : > { %v2446_v13 = vpop.f32.mrf.mxu0 }
  0xed   : > { %v2448_v14 = vpop.f32.mrf.mxu1 }
  0xee   : > { %v2450_v15 = vpop.f32.mrf.mxu0 }
  0xef   : > { %v2452_v16 = vpop.f32.mrf.mxu1 }
  0xf0   : > { %v2454_v17 = vpop.f32.mrf.mxu0 }
  0xf1   : > { %v2456_v18 = vpop.f32.mrf.mxu1 }
  0xf2   : > { %v2458_v19 = vpop.f32.mrf.mxu0 }
  0xf3   : > { %v2460_v20 = vpop.f32.mrf.mxu1 }
  0xf4   : > { %v2462_v21 = vpop.f32.mrf.mxu0 }
  0xf5   : > { %v807_v22 = vpop.f32.mrf.mxu1 }
  0xf6   : > { %v2464_v23 = vpop.f32.mrf.mxu0  ;;  %v1072_v26 = vmul.f32 %v807_v22, %v407_v53  ;;  %v1179_v53 = vld [vmem:[%s2574_s4 + $0x218] sm:$0xff] }
  0xf7   : > { %v809_v24 = vpop.f32.mrf.mxu1 }
  0xf8   : > { %v1073_v25 = vmul.f32 %v809_v24, %v409_v55  ;;  %v1178_v24 = vld [vmem:[%s2574_s4 + $0x210] sm:$0xff] }
  0xf9   : > { %v2466_v27 = vpop.f32.mrf.mxu0  ;;  %v813_v28 = vpop.f32.mrf.mxu1 }
  0xfa   : > { %1283 = vmatprep.mubr.f32.mxu0 %v1073_v25  ;;  %v1077_v34 = vmul.f32 %v813_v28, %v413_v57 }
  0xfb   : > { %v2471_v30 = vpop.f32.mrf.mxu0  ;;  %v815_v31 = vpop.f32.mrf.mxu1  ;;  %1284 = vmatmul.mubr.f32.vlgmr.msra.gmra.mxu0 %v1072_v26 }
  0xfc   : > { %v1078_v32 = vmul.f32 %v815_v31, %v415_v59  ;;  %1883 = vmatpush3.msra.mxu0 %v2373_v40  ;;  %v1177_v31 = vld [vmem:[%s2574_s4 + $0x208] sm:$0xff] }
  0xfd   : > { %v2477_v35 = vpop.f32.mrf.mxu0  ;;  %v819_v36 = vpop.f32.mrf.mxu1  ;;  %1884 = vmatprep.subr.mxu0 %v1185_v29 }
  0xfe   : > { %1288 = vmatprep.mubr.f32.mxu0 %v1078_v32  ;;  %1885 = vmatpush3.msra.mxu0 %v1185_v29  ;;  %v1082_v42 = vmul.f32 %v819_v36, %v419_v61 }
  0xff   : > { %v2482_v38 = vpop.f32.mrf.mxu0  ;;  %v821_v39 = vpop.f32.mrf.mxu1  ;;  %1289 = vmatmul.mubr.f32.gmra.mxu0 %v1077_v34  ;;  %1886 = vmatprep.subr.mxu0 %v1184_v33 }
 0x100   : > { %v1083_v40 = vmul.f32 %v821_v39, %v421_v63  ;;  %1887 = vmatpush3.msra.mxu0 %v1184_v33 }
 0x101   : > { %v2487_v43 = vpop.f32.mrf.mxu0  ;;  %v825_v44 = vpop.f32.mrf.mxu1  ;;  %1888 = vmatprep.subr.mxu0 %v1183_v37 }
 0x102   : > { %1293 = vmatprep.mubr.f32.mxu0 %v1083_v40  ;;  %1889 = vmatpush3.msra.mxu0 %v1183_v37  ;;  %v1087_v50 = vmul.f32 %v825_v44, %v2424_v1  ;;  %v1176_v37 = vld [vmem:[%s2574_s4 + $0x200] sm:$0xff] }
 0x103   : > { %v2492_v46 = vpop.f32.mrf.mxu0  ;;  %v827_v47 = vpop.f32.mrf.mxu1  ;;  %1294 = vmatmul.mubr.f32.gmra.mxu0 %v1082_v42  ;;  %1890 = vmatprep.subr.mxu0 %v1182_v41 }
 0x104   : > { %v1088_v48 = vmul.f32 %v827_v47, %v427_v3  ;;  %1891 = vmatpush3.msra.mxu0 %v1182_v41 }
 0x105   : > { %v831_v51 = vpop.f32.mrf.mxu1  ;;  %v920_v52 = vpop.f32.mrf.mxu0  ;;  %1892 = vmatprep.subr.mxu0 %v1181_v45 }
 0x106   : > { %1298 = vmatprep.mubr.f32.mxu0 %v1088_v48  ;;  %1893 = vmatpush3.msra.mxu0 %v1181_v45  ;;  %v1092_v63 = vmul.f32 %v831_v51, %v2430_v5  ;;  %v1074_v1 = vmul.f32 %v920_v52, %v2412_v54 }
 0x107   : > { %v833_v55 = vpop.f32.mrf.mxu1  ;;  %v922_v57 = vpop.f32.mrf.mxu0  ;;  %1299 = vmatmul.mubr.f32.gmra.mxu0 %v1087_v50  ;;  %1894 = vmatprep.subr.mxu0 %v1180_v49 }
 0x108   : > { %v1093_v59 = vmul.f32 %v833_v55, %v2434_v7  ;;  %v1075_v61 = vmul.f32 %v922_v57, %v2414_v56  ;;  %1895 = vmatpush3.msra.mxu0 %v1180_v49 }
 0x109   : > { %v837_v3 = vpop.f32.mrf.mxu1  ;;  %v926_v22 = vpop.f32.mrf.mxu0  ;;  %1896 = vmatprep.subr.mxu0 %v1179_v53 }
 0x10a   : > { %1303 = vmatprep.mubr.f32.mxu0 %v1093_v59  ;;  %1388 = vmatprep.mubr.f32.mxu1 %v1075_v61  ;;  %v1097_v54 = vmul.f32 %v837_v3, %v2438_v9  ;;  %v1079_v5 = vmul.f32 %v926_v22, %v2416_v58 }
 0x10b   : > { %v839_v25 = vpop.f32.mrf.mxu1  ;;  %v928_v26 = vpop.f32.mrf.mxu0  ;;  %1304 = vmatmul.mubr.f32.gmra.mxu0 %v1092_v63  ;;  %1389 = vmatmul.mubr.f32.vlgmr.msra.gmra.mxu1 %v1074_v1 }
 0x10c   : > { %v1098_v56 = vmul.f32 %v839_v25, %v2442_v11  ;;  %v1080_v7 = vmul.f32 %v928_v26, %v2418_v60  ;;  %1897 = vmatpush3.msra.mxu0 %v1179_v53 }
 0x10d   : > { %v843_v28 = vpop.f32.mrf.mxu1  ;;  %v932_v29 = vpop.f32.mrf.mxu0  ;;  %1898 = vmatprep.subr.mxu0 %v1178_v24 }
 0x10e   : > { %1308 = vmatprep.mubr.f32.mxu0 %v1098_v56  ;;  %1393 = vmatprep.mubr.f32.mxu1 %v1080_v7  ;;  %v1102_v58 = vmul.f32 %v843_v28, %v2446_v13  ;;  %v1084_v9 = vmul.f32 %v932_v29, %v2420_v62 }
 0x10f   : > { %v845_v32 = vpop.f32.mrf.mxu1  ;;  %v934_v33 = vpop.f32.mrf.mxu0  ;;  %1309 = vmatmul.mubr.f32.gmra.mxu0 %v1097_v54  ;;  %1394 = vmatmul.mubr.f32.gmra.mxu1 %v1079_v5 }
 0x110   : > { %v1103_v60 = vmul.f32 %v845_v32, %v2450_v15  ;;  %v1085_v11 = vmul.f32 %v934_v33, %v2422_v0  ;;  %1899 = vmatpush3.msra.mxu0 %v1178_v24 }
 0x111   : > { %v849_v34 = vpop.f32.mrf.mxu1  ;;  %v938_v36 = vpop.f32.mrf.mxu0  ;;  %1900 = vmatprep.subr.mxu0 %v1177_v31 }
 0x112   : > { %1313 = vmatprep.mubr.f32.mxu0 %v1103_v60  ;;  %1398 = vmatprep.mubr.f32.mxu1 %v1085_v11  ;;  %v1107_v62 = vmul.f32 %v849_v34, %v2454_v17  ;;  %v1089_v13 = vmul.f32 %v938_v36, %v2426_v2  ;;  %v1679_v34 = vld [vmem:[%s2575_s5] ss:$0 sm:$0xff] }
 0x113   : > { %v851_v39 = vpop.f32.mrf.mxu1  ;;  %v940_v40 = vpop.f32.mrf.mxu0  ;;  %1314 = vmatmul.mubr.f32.gmra.mxu0 %v1102_v58  ;;  %1399 = vmatmul.mubr.f32.gmra.mxu1 %v1084_v9 }
 0x114   : > { %v1108_v0 = vmul.f32 %v851_v39, %v2458_v19  ;;  %v1090_v15 = vmul.f32 %v940_v40, %v2428_v4  ;;  %1901 = vmatpush3.msra.mxu0 %v1177_v31 }
 0x115   : > { %v944_v41 = vpop.f32.mrf.mxu0  ;;  %v1872_v42 = vpop.f32.mrf.mxu1  ;;  %1902 = vmatprep.subr.mxu0 %v1176_v37 }
 0x116   : > { %1318 = vmatprep.mubr.f32.mxu0 %v1108_v0  ;;  %1403 = vmatprep.mubr.f32.mxu1 %v1090_v15  ;;  %v1094_v4 = vmul.f32 %v944_v41, %v2432_v6  ;;  %v1081_v17 = vmul.f32 %v1872_v42, %v2462_v21 }
 0x117   : > { %v946_v44 = vpop.f32.mrf.mxu0  ;;  %v1033_v45 = vpop.f32.mrf.mxu1  ;;  %1319 = vmatmul.mubr.f32.gmra.mxu0 %v1107_v62  ;;  %1404 = vmatmul.mubr.f32.gmra.mxu1 %v1089_v13 }
 0x118   : > { %v1095_v47 = vmul.f32 %v946_v44, %v2436_v8  ;;  %v1076_v19 = vmul.f32 %v1033_v45, %v2464_v23  ;;  %1903 = vmatpush3.msra.mxu0 %v1176_v37 }
 0x119   : > { %v950_v2 = vpop.f32.mrf.mxu0  ;;  %v1875_v48 = vpop.f32.mrf.mxu1 }
 0x11a   : > { %1408 = vmatprep.mubr.f32.mxu1 %v1095_v47  ;;  %1904 = vmatprep.mubr.msk.f32.mxu0 %vm1194_vm4, %v1076_v19  ;;  %v1099_v23 = vmul.f32 %v950_v2, %v2440_v10  ;;  %v1091_v6 = vmul.f32 %v1875_v48, %v2466_v27 }
 0x11b   : > { %v952_v49 = vpop.f32.mrf.mxu0  ;;  %v1043_v50 = vpop.f32.mrf.mxu1  ;;  %1409 = vmatmul.mubr.f32.gmra.mxu1 %v1094_v4  ;;  %1905 = vmatmul.mubr.msk.f32.vlgmr.msra.gmra.mxu0 %vm1194_vm4, %v1081_v17 }
 0x11c   : > { %v1100_v51 = vmul.f32 %v952_v49, %v2444_v12  ;;  %v1086_v8 = vmul.f32 %v1043_v50, %v2471_v30 }
 0x11d   : > { %v956_v52 = vpop.f32.mrf.mxu0  ;;  %v1878_v21 = vpop.f32.mrf.mxu1 }
 0x11e   : > { %1413 = vmatprep.mubr.f32.mxu1 %v1100_v51  ;;  %1907 = vmatprep.mubr.msk.f32.mxu0 %vm1194_vm4, %v1086_v8  ;;  %v1104_v30 = vmul.f32 %v956_v52, %v2448_v14  ;;  %v1101_v10 = vmul.f32 %v1878_v21, %v2477_v35 }
 0x11f   : > { %v958_v53 = vpop.f32.mrf.mxu0  ;;  %v1053_v55 = vpop.f32.mrf.mxu1  ;;  %1414 = vmatmul.mubr.f32.gmra.mxu1 %v1099_v23  ;;  %1908 = vmatmul.mubr.msk.f32.gmra.mxu0 %vm1194_vm4, %v1091_v6 }
 0x120   : > { %v1105_v57 = vmul.f32 %v958_v53, %v2452_v16  ;;  %v1096_v12 = vmul.f32 %v1053_v55, %v2482_v38 }
 0x121   : > { %v962_v59 = vpop.f32.mrf.mxu0  ;;  %v1881_v27 = vpop.f32.mrf.mxu1 }
 0x122   : > { %1418 = vmatprep.mubr.f32.mxu1 %v1105_v57  ;;  %1910 = vmatprep.mubr.msk.f32.mxu0 %vm1194_vm4, %v1096_v12  ;;  %v1109_v38 = vmul.f32 %v962_v59, %v2456_v18  ;;  %v1111_v14 = vmul.f32 %v1881_v27, %v2487_v43 }
 0x123   : > { %v964_v61 = vpop.f32.mrf.mxu0  ;;  %v1063_v63 = vpop.f32.mrf.mxu1  ;;  %1419 = vmatmul.mubr.f32.gmra.mxu1 %v1104_v30  ;;  %1911 = vmatmul.mubr.msk.f32.gmra.mxu0 %vm1194_vm4, %v1101_v10 }
 0x124   : > { %v1110_v1 = vmul.f32 %v964_v61, %v2460_v20  ;;  %v1106_v16 = vmul.f32 %v1063_v63, %v2492_v46 }
 0x126   : > { %1423 = vmatprep.mubr.f32.mxu1 %v1110_v1  ;;  %1913 = vmatprep.mubr.msk.f32.mxu0 %vm1194_vm4, %v1106_v16 }
 0x127   : > { %1424 = vmatmul.mubr.f32.gmra.mxu1 %v1109_v38  ;;  %1914 = vmatmul.mubr.msk.f32.gmra.mxu0 %vm1194_vm4, %v1111_v14 }
 0x1bb   : > { %v1745_v35 = vpop.f32.mrf.mxu0 }
 0x1bd   : > { %v1746_v3 = vpop.f32.mrf.mxu0 }
 0x1be   : > { %v1747_v58 = vadd.f32 %v1746_v3, %v1745_v35 }
 0x1bf   : > { %v1748_v22 = vpop.f32.mrf.mxu0 }
 0x1c0   : > { %v1286_v41 = vadd.f32 %v1747_v58, %v1679_v34 }
 0x1c1   : > { %v1749_v24 = vpop.f32.mrf.mxu0 }
 0x1c2   : > { %v1750_v33 = vadd.f32 %v1749_v24, %v1748_v22 }
 0x1c3   : > { %v1751_v25 = vpop.f32.mrf.mxu0 }
 0x1c4   : > { %v1291_v39 = vadd.f32 %v1750_v33, %v1679_v34 }
 0x1c5   : > { %v1752_v26 = vpop.f32.mrf.mxu0 }
 0x1c6   : > { %v1753_v15 = vadd.f32 %v1752_v26, %v1751_v25 }
 0x1c7   : > { %v1754_v56 = vpop.f32.mrf.mxu0 }
 0x1c8   : > { %v1296_v48 = vadd.f32 %v1753_v15, %v1679_v34 }
 0x1c9   : > { %v1755_v20 = vpop.f32.mrf.mxu0 }
 0x1ca   : > { %v1756_v40 = vadd.f32 %v1755_v20, %v1754_v56 }
 0x1cb   : > { %v1757_v7 = vpop.f32.mrf.mxu0  ;;  %v1801_v46 = vpop.f32.mrf.mxu1 }
 0x1cc   : > { %v1301_v19 = vadd.f32 %v1756_v40, %v1679_v34 }
 0x1cd   : > { %v1758_v54 = vpop.f32.mrf.mxu0  ;;  %v1802_v18 = vpop.f32.mrf.mxu1 }
 0x1ce   : > { %v1803_v0 = vadd.f32 %v1802_v18, %v1801_v46  ;;  %v1759_v51 = vadd.f32 %v1758_v54, %v1757_v7 }
 0x1cf   : > { %v1760_v5 = vpop.f32.mrf.mxu0  ;;  %v1804_v43 = vpop.f32.mrf.mxu1 }
 0x1d0   : > { %v1391_v2 = vadd.f32 %v1803_v0, %v1286_v41  ;;  %v1306_v59 = vadd.f32 %v1759_v51, %v1679_v34 }
 0x1d1   : > { %v1761_v28 = vpop.f32.mrf.mxu0  ;;  %v1805_v29 = vpop.f32.mrf.mxu1 }
 0x1d2   : > { %v1806_v9 = vadd.f32 %v1805_v29, %v1804_v43  ;;  %v1762_v8 = vadd.f32 %v1761_v28, %v1760_v5 }
 0x1d3   : > { %v1763_v31 = vpop.f32.mrf.mxu0  ;;  %v1807_v32 = vpop.f32.mrf.mxu1 }
 0x1d4   : > { %v1396_v44 = vadd.f32 %v1806_v9, %v1291_v39  ;;  %v1311_v27 = vadd.f32 %v1762_v8, %v1679_v34 }
 0x1d5   : > { %v1764_v60 = vpop.f32.mrf.mxu0  ;;  %v1808_v11 = vpop.f32.mrf.mxu1 }
 0x1d6   : > { %v1809_v4 = vadd.f32 %v1808_v11, %v1807_v32  ;;  %v1765_v12 = vadd.f32 %v1764_v60, %v1763_v31 }
 0x1d7   : > { %v1766_v36 = vpop.f32.mrf.mxu0  ;;  %v1810_v37 = vpop.f32.mrf.mxu1 }
 0x1d8   : > { %v1401_v57 = vadd.f32 %v1809_v4, %v1296_v48  ;;  %v1316_v35 = vadd.f32 %v1765_v12, %v1679_v34 }
 0x1d9   : > { %v1767_v62 = vpop.f32.mrf.mxu0  ;;  %v1811_v13 = vpop.f32.mrf.mxu1 }
 0x1da   : > { %v1812_v42 = vadd.f32 %v1811_v13, %v1810_v37  ;;  %v1768_v24 = vadd.f32 %v1767_v62, %v1766_v36 }
 0x1db   : > { %v1813_v45 = vpop.f32.mrf.mxu1  ;;  %v1906_v47 = vpop.f32.mrf.mxu0 }
 0x1dc   : > { %v1501_v17 = vadd.f32 %v1906_v47, %v1396_v44  ;;  %v1406_v6 = vadd.f32 %v1812_v42, %v1301_v19  ;;  %v1321_v5 = vadd.f32 %v1768_v24, %v1679_v34 }
 0x1dd   : > { %v1814_v49 = vpop.f32.mrf.mxu1  ;;  %v1495_v50 = vpop.f32.mrf.mxu0 }
 0x1de   : > { %1535 = vst [vmem:[%s2557_s11 + $0x8] sm:$0xff] %v1501_v17  ;;  %v1496_v23 = vadd.f32 %v1495_v50, %v1391_v2  ;;  %v1815_v53 = vadd.f32 %v1814_v49, %v1813_v45 }
 0x1df   : > { %v1816_v52 = vpop.f32.mrf.mxu1  ;;  %v1909_v21 = vpop.f32.mrf.mxu0 }
 0x1e0   : > { %1534 = vst [vmem:[%s2557_s11] sm:$0xff] %v1496_v23  ;;  %v1511_v55 = vadd.f32 %v1909_v21, %v1406_v6  ;;  %v1411_v14 = vadd.f32 %v1815_v53, %v1306_v59 }
 0x1e1   : > { %v1817_v30 = vpop.f32.mrf.mxu1  ;;  %v1505_v10 = vpop.f32.mrf.mxu0 }
 0x1e2   : > { %1537 = vst [vmem:[%s2557_s11 + $0x18] sm:$0xff] %v1511_v55  ;;  %v1818_v61 = vadd.f32 %v1817_v30, %v1816_v52  ;;  %v1506_v63 = vadd.f32 %v1505_v10, %v1401_v57 }
 0x1e3   : > { %v1819_v1 = vpop.f32.mrf.mxu1  ;;  %v1912_v16 = vpop.f32.mrf.mxu0 }
 0x1e4   : > { %1536 = vst [vmem:[%s2557_s11 + $0x10] sm:$0xff] %v1506_v63  ;;  %v1416_v38 = vadd.f32 %v1818_v61, %v1311_v27 }
 0x1e5   : > { %v1820_v3 = vpop.f32.mrf.mxu1  ;;  %v1515_v22 = vpop.f32.mrf.mxu0 }
 0x1e6   : > { %v1521_v25 = vadd.f32 %v1912_v16, %v1416_v38  ;;  %v1821_v26 = vadd.f32 %v1820_v3, %v1819_v1  ;;  %v1516_v56 = vadd.f32 %v1515_v22, %v1411_v14 }
 0x1e7   : > { %v1822_v20 = vpop.f32.mrf.mxu1  ;;  %v1915_v7 = vpop.f32.mrf.mxu0 }
 0x1e8   : > { %1539 = vst [vmem:[%s2557_s11 + $0x28] sm:$0xff] %v1521_v25  ;;  %1538 = vst [vmem:[%s2557_s11 + $0x20] sm:$0xff] %v1516_v56  ;;  %v1421_v46 = vadd.f32 %v1821_v26, %v1316_v35 }
 0x1e9   : > { %v1823_v54 = vpop.f32.mrf.mxu1  ;;  %v1525_v18 = vpop.f32.mrf.mxu0 }
 0x1ea   : > { %v1824_v43 = vadd.f32 %v1823_v54, %v1822_v20  ;;  %v1526_v28 = vadd.f32 %v1525_v18, %v1421_v46 }
 0x1ec   : > { %v1426_v29 = vadd.f32 %v1824_v43, %v1321_v5  ;;  %1540 = vst [vmem:[%s2557_s11 + $0x30] sm:$0xff] %v1526_v28 }
 0x1ee   : > { %v1531_v31 = vadd.f32 %v1915_v7, %v1426_v29 }
 0x1f0   : > { %1541 = vst [vmem:[%s2557_s11 + $0x38] sm:$0xff] %v1531_v31 }
 0x1f1 PF: > { %s16_s21 = sadd.s32 1, %s1931_s21  }
 0x1f2   : > { %p13_p4 = scmp.ge.s32.totalorder %s16_s21, 4  }
 0x1f4   :  { %15 = sbr.rel (!%p13_p4) target bundleno = 1 (0x1), region = 77 }

</bundles_post_ra>
